<compile_context>
chip_gen: v6e
topology: v6e:2x2x1
jax: 0.10.0
libtpu: 0.0.40
codegen_flags: <defaults>
</compile_context>

<pallas_src>
import jax
import jax.numpy as jnp
import numpy as np
from jax.experimental import pallas as pl
from jax.experimental.pallas import tpu as pltpu

ALPHA = 0.5          # tversky alpha (forward hard-codes 0.5)
GAMMA = 0.5          # focal gamma  (forward hard-codes 0.5)
EPS = 1e-10
# fuse_kernel parameter init from __init__: [[6/10],[3/10],[1/10]] (1,3,1,1)
FUSE_W = (6.0 / 10.0, 3.0 / 10.0, 1.0 / 10.0)
# Static guard: the in-kernel shortcut `target = (x1 hit) | (x2 hit)` is exact
# only for these weights + threshold 0.1; revisit if they become learnable.
assert FUSE_W == (0.6, 0.3, 0.1)

_LANE0 = 128   # lane offset of the data band inside the staging scratch
_ROW0 = 8      # row  offset of the data band (keeps the big store 8-aligned)


def _detail_kernel(gt_ref, halo_ref, logit_ref, out_ref, pbuf):
    TH = gt_ref.shape[1]
    W = gt_ref.shape[2]
    L = _LANE0
    R = _ROW0
    rows = pbuf.shape[0]

    t = pl.program_id(2)

    @pl.when(t == 0)
    def _():
        # Zero only the 128-lane border strips of the staging scratch (the
        # data band and halo rows are fully rewritten every tile); the strips
        # provide the 3x3-conv zero padding.  Also reset the accumulators.
        pbuf[:, 0:L] = jnp.zeros((rows, L), jnp.float32)
        pbuf[:, L + W:L + W + 128] = jnp.zeros((rows, 128), jnp.float32)
        out_ref[...] = jnp.zeros(out_ref.shape, jnp.float32)

    g = gt_ref[0].astype(jnp.float32)            # (TH, W)
    halo = halo_ref[0, 0].astype(jnp.float32)    # (2, W): row above / below

    # Stage the gt tile (+1-row halos) into the zero-bordered scratch so the
    # 3x3 laplacian below is plain shifted slices with zero padding.
    pbuf[R:R + TH, L:L + W] = g
    pbuf[R - 1:R, L:L + W] = halo[0:1, :]
    pbuf[R + TH:R + TH + 1, L:L + W] = halo[1:2, :]

    # 3x3 laplacian, padding=1: out = 8*center - neighbors = 9*center - box3x3
    rs = (pbuf[R - 1:R - 1 + TH, L - 1:L + W + 1] +
          pbuf[R:R + TH,         L - 1:L + W + 1] +
          pbuf[R + 1:R + 1 + TH, L - 1:L + W + 1])           # row 3-sum
    box = rs[:, 0:W] + rs[:, 1:W + 1] + rs[:, 2:W + 2]       # col 3-sum
    conv = jnp.maximum(9.0 * g - box, 0.0)                   # clamp(min=0)

    # stride-2 conv + nearest upsample == dense conv sampled at
    # (2*(i//2), 2*(j//2)); XLU rolls + parity selects.  The wrapped-around
    # row/col only appears where the parity mask keeps the unshifted operand
    # (row 0 / col 0 are even), so no masking is needed.
    r_even = (jax.lax.broadcasted_iota(jnp.int32, (TH, 1), 0) & 1) == 0
    c_even = (jax.lax.broadcasted_iota(jnp.int32, (1, W), 1) & 1) == 0
    a = jnp.where(r_even, conv, pltpu.roll(conv, 1, axis=0))   # conv[i-i%2, j]
    c2 = jnp.where(c_even, a, pltpu.roll(a, 1, axis=1))        # conv[i-i%2, j-j%2]

    # Fuse + threshold: x4 branch provably dead for FUSE_W=(.6,.3,.1)/thr 0.1;
    # x8 branch of the PyTorch code is never fused.
    target = jnp.where(jnp.logical_or(conv > 0.1, c2 > 0.1), 1.0, 0.0)

    x = logit_ref[0].astype(jnp.float32)
    prob = jax.nn.sigmoid(x)
    # BCE-with-logits = max(x,0) - x*t + log1p(exp(-|x|)); reuse prob:
    # log1p(exp(-|x|)) == -log(where(x>=0, prob, 1-prob)).  (For very large
    # |x| the log term rounds to 0 instead of ~exp(-|x|): <1e-7/elem error.)
    bce = (jnp.maximum(x, 0.0) - x * target -
           jnp.log(jnp.where(x >= 0.0, prob, 1.0 - prob)))

    tp = jnp.sum(target * prob, keepdims=True)     # (1, 1)
    sp = jnp.sum(prob, keepdims=True)              # fp = sp - tp (wrapper)
    st = jnp.sum(target, keepdims=True)            # fn = st - tp (wrapper)
    ce = jnp.sum(bce, keepdims=True)

    lane = jax.lax.broadcasted_iota(jnp.int32, (1, 128), 1)
    partial = (jnp.where(lane == 0, tp, 0.0) + jnp.where(lane == 1, sp, 0.0) +
               jnp.where(lane == 2, st, 0.0) + jnp.where(lane == 3, ce, 0.0))
    out_ref[...] += partial        # broadcast over the (1,1,8,128) out block


def _pick_tile_h(H, W, max_elems):
    """Largest multiple-of-8 divisor of H with at most max_elems per tile."""
    if H % 8 != 0:
        return H                     # single full-height tile
    limit = max(8, max_elems // max(W, 1))
    best = 8
    t = 8
    while t <= H:
        if H % t == 0 and t <= limit:
            best = t
        t += 8
    return best


def detail_aggregate_loss(boundary_logits, gtmasks, tile_h=None):
    """boundary_logits: (N, 1, H, W); gtmasks: (N, H, W) in any real dtype."""
    N, C, H, W = boundary_logits.shape
    assert C == 1
    # TODO(synk): bilinear align_corners=True resize of the logits when the
    # spatial sizes differ is not implemented; sizes must match here.
    assert boundary_logits.shape[-2:] == gtmasks.shape[-2:]
    assert H % 2 == 0 and W % 2 == 0   # keeps nearest-up index math exact

    if not jnp.issubdtype(gtmasks.dtype, jnp.floating):
        gtmasks = gtmasks.astype(jnp.float32)   # bf16 / f16 stream through

    # Generation-aware sizing (v5e/v6e: 128 MiB VMEM; v7x: 64 MiB per TC).
    try:
        vmem_cap = int(pltpu.get_tpu_info().vmem_capacity_bytes)
    except Exception:                       # conservative fallback
        vmem_cap = 64 * 1024 * 1024
    max_tile_elems = 512 * 1024 if vmem_cap >= 100 * 1024 * 1024 else 256 * 1024

    if tile_h is None:
        tile_h = _pick_tile_h(H, W, max_tile_elems)
    assert H % tile_h == 0 and tile_h % 2 == 0
    assert tile_h % 8 == 0 or tile_h == H
    n_tiles = H // tile_h

    logits = boundary_logits.reshape(N, H, W)

    # One gt row above / below every tile (zeros at the image border): the
    # only wrapper-side prep (2 rows per tile, no padded gt copy).
    zrow = jnp.zeros((N, 1, W), gtmasks.dtype)
    top = jnp.concatenate(
        [zrow, gtmasks[:, tile_h - 1::tile_h, :][:, :n_tiles - 1, :]], axis=1)
    bot = jnp.concatenate([gtmasks[:, tile_h::tile_h, :], zrow], axis=1)
    halo = jnp.stack([top, bot], axis=2)          # (N, n_tiles, 2, W)

    # Split the row-tile (reduction) axis into a size-2 "parallel" half axis
    # when possible so both v7x TensorCores have work even at N == 1.
    P = 2 if (n_tiles % 2 == 0 and n_tiles >= 2) else 1
    T = n_tiles // P

    tile = tile_h * W
    est = ((tile_h + 16) * (W + 256) * 4 +            # staging scratch
           2 * tile * gtmasks.dtype.itemsize +        # gt double buffer
           2 * tile * logits.dtype.itemsize +         # logit double buffer
           2 * 2 * W * gtmasks.dtype.itemsize +       # halo double buffer
           2 * 8 * 128 * 4 +                          # accumulator block
           12 * tile * 4)                             # live f32 temporaries
    cp = dict(dimension_semantics=("parallel", "parallel", "arbitrary"))
    if est > 12 * 1024 * 1024:
        cp["vmem_limit_bytes"] = int(min(max(est * 3 // 2, 32 * 1024 * 1024),
                                         vmem_cap * 3 // 4))

    out = pl.pallas_call(
        _detail_kernel,
        out_shape=jax.ShapeDtypeStruct((N, P, 8, 128), jnp.float32),
        grid_spec=pltpu.PrefetchScalarGridSpec(
            num_scalar_prefetch=0,
            grid=(N, P, T),
            in_specs=[
                pl.BlockSpec((1, tile_h, W), lambda n, p, t: (n, p * T + t, 0)),
                pl.BlockSpec((1, 1, 2, W), lambda n, p, t: (n, p * T + t, 0, 0)),
                pl.BlockSpec((1, tile_h, W), lambda n, p, t: (n, p * T + t, 0)),
            ],
            out_specs=pl.BlockSpec((1, 1, 8, 128), lambda n, p, t: (n, p, 0, 0)),
            scratch_shapes=[pltpu.VMEM((tile_h + 16, W + 256), jnp.float32)],
        ),
        compiler_params=pltpu.CompilerParams(**cp),
    )(gtmasks, halo, logits)

    res = out[:, :, 0, :].sum(axis=1)    # (N, 128); sublane rows are identical
    tp = res[:, 0]
    fp = res[:, 1] - tp            # sum(prob)   - tp
    fn = res[:, 2] - tp            # sum(target) - tp
    ce_sum = res[:, 3]

    tversky = (tp + EPS) / (tp + ALPHA * fp + (1.0 - ALPHA) * fn + EPS)
    ft_loss = jnp.mean((1.0 - tversky) ** GAMMA)
    ce_loss = jnp.sum(ce_sum) / (N * C * H * W)
    return ce_loss, ft_loss


def _reference(boundary_logits, gtmasks):
    """Pure-JAX reference of the PyTorch forward (keeps the full x1/x2/x4
    pyramid, so it also validates the in-kernel x4-removal shortcut)."""
    lap = jnp.array([-1, -1, -1, -1, 8, -1, -1, -1, -1],
                    jnp.float32).reshape(1, 1, 3, 3)
    x = gtmasks[:, None].astype(jnp.float32)

    def conv(s):
        return jax.lax.conv_general_dilated(
            x, lap, (s, s), ((1, 1), (1, 1)),
            dimension_numbers=('NCHW', 'OIHW', 'NCHW'))

    H, W = gtmasks.shape[1], gtmasks.shape[2]
    bt = jnp.where(jnp.clip(conv(1), 0, None) > 0.1, 1.0, 0.0)

    def nearest_up(y):
        h, w = y.shape[2], y.shape[3]
        ri = jnp.arange(H) * h // H
        ci = jnp.arange(W) * w // W
        return y[:, :, ri][:, :, :, ci]

    bt2 = jnp.where(nearest_up(jnp.clip(conv(2), 0, None)) > 0.1, 1.0, 0.0)
    bt4 = jnp.where(nearest_up(jnp.clip(conv(4), 0, None)) > 0.1, 1.0, 0.0)
    fused = FUSE_W[0] * bt + FUSE_W[1] * bt2 + FUSE_W[2] * bt4
    target = jnp.where(fused > 0.1, 1.0, 0.0)

    logits = boundary_logits.astype(jnp.float32)
    prob = jax.nn.sigmoid(logits)
    tp = jnp.sum(target * prob, axis=(2, 3))
    fp = jnp.sum((1 - target) * prob, axis=(2, 3))
    fn = jnp.sum(target * (1 - prob), axis=(2, 3))
    tversky = (tp + EPS) / (tp + ALPHA * fp + (1 - ALPHA) * fn + EPS)
    ft = jnp.mean((1 - tversky) ** GAMMA)
    ce = jnp.mean(jnp.maximum(logits, 0) - logits * target +
                  jnp.log1p(jnp.exp(-jnp.abs(logits))))
    return ce, ft


if __name__ == "__main__":
    key = jax.random.PRNGKey(0)
    k1, k2 = jax.random.split(key)
    N, H, W = 2, 16, 16
    gtmasks = (jax.random.uniform(k1, (N, H, W)) > 0.5).astype(jnp.float32)
    boundary_logits = jax.random.normal(k2, (N, 1, H, W), jnp.float32)

    # Exercise both the split-reduction path (2 row tiles -> P=2) and the
    # single full-height tile path (P=1).
    ce_a, ft_a = detail_aggregate_loss(boundary_logits, gtmasks, tile_h=8)
    ce_b, ft_b = detail_aggregate_loss(boundary_logits, gtmasks)
    jax.block_until_ready((ce_a, ft_a, ce_b, ft_b))

    ce_ref, ft_ref = _reference(boundary_logits, gtmasks)
    for ce, ft in ((ce_a, ft_a), (ce_b, ft_b)):
        np.testing.assert_allclose(np.asarray(ce), np.asarray(ce_ref),
                                   rtol=1e-5, atol=1e-6)
        np.testing.assert_allclose(np.asarray(ft), np.asarray(ft_ref),
                                   rtol=1e-5, atol=1e-6)
    print("KERNEL_OK")
</pallas_src>

<mosaic_0001>
module attributes {stable_mosaic.version = 11 : i64} {
  func.func @_detail_kernel(%arg0: i32, %arg1: i32, %arg2: i32, %arg3: memref<1x8x16xf32, #tpu.memory_space<vmem>>, %arg4: memref<1x1x2x16xf32, #tpu.memory_space<vmem>>, %arg5: memref<1x8x16xf32, #tpu.memory_space<vmem>>, %arg6: memref<1x1x8x128xf32, #tpu.memory_space<vmem>>, %arg7: memref<24x272xf32, #tpu.memory_space<vmem>>) attributes {dimension_semantics = [#tpu.dimension_semantics<parallel>, #tpu.dimension_semantics<parallel>, #tpu.dimension_semantics<arbitrary>], iteration_bounds = array<i64: 2, 2, 1>, scalar_prefetch = 0 : i64, scratch_operands = 1 : i64, tpu.core_type = #tpu.core_type<tc>, window_params = [{transform_indices = @transform_0, window_bounds = array<i64: 1, 8, 16>}, {transform_indices = @transform_1, window_bounds = array<i64: 1, 1, 2, 16>}, {transform_indices = @transform_2, window_bounds = array<i64: 1, 8, 16>}, {transform_indices = @transform_3, window_bounds = array<i64: 1, 1, 8, 128>}]} {
    %c0_i32 = arith.constant 0 : i32
    %0 = arith.cmpi eq, %arg2, %c0_i32 : i32
    %1 = arith.extui %0 : i1 to i32
    %c0_i32_0 = arith.constant 0 : i32
    %2 = arith.cmpi ne, %1, %c0_i32_0 : i32
    scf.if %2 {
      %cst_48 = arith.constant 0.000000e+00 : f32
      %125 = vector.broadcast %cst_48 : f32 to vector<24x128xf32>
      %c0_49 = arith.constant 0 : index
      %c0_50 = arith.constant 0 : index
      %126 = vector.load %arg7[%c0_49, %c0_50] : memref<24x272xf32, #tpu.memory_space<vmem>>, vector<24x128xf32>
      tpu.vector_store %arg7[%c0_49, %c0_50], %125 {strides = array<i32>} : memref<24x272xf32, #tpu.memory_space<vmem>>, vector<24x128xf32>,
      %cst_51 = arith.constant 0.000000e+00 : f32
      %127 = vector.broadcast %cst_51 : f32 to vector<24x128xf32>
      %c0_52 = arith.constant 0 : index
      %c144 = arith.constant 144 : index
      %128 = vector.load %arg7[%c0_52, %c144] : memref<24x272xf32, #tpu.memory_space<vmem>>, vector<24x128xf32>
      tpu.vector_store %arg7[%c0_52, %c144], %127 {strides = array<i32>} : memref<24x272xf32, #tpu.memory_space<vmem>>, vector<24x128xf32>,
      %cst_53 = arith.constant 0.000000e+00 : f32
      %129 = vector.broadcast %cst_53 : f32 to vector<1x1x8x128xf32>
      %c0_54 = arith.constant 0 : index
      %c0_55 = arith.constant 0 : index
      %c0_56 = arith.constant 0 : index
      %c0_57 = arith.constant 0 : index
      %130 = vector.load %arg6[%c0_54, %c0_55, %c0_56, %c0_57] : memref<1x1x8x128xf32, #tpu.memory_space<vmem>>, vector<1x1x8x128xf32>
      tpu.vector_store %arg6[%c0_54, %c0_55, %c0_56, %c0_57], %129 {strides = array<i32>} : memref<1x1x8x128xf32, #tpu.memory_space<vmem>>, vector<1x1x8x128xf32>,
    } else {
    }
    %c0 = arith.constant 0 : index
    %c0_1 = arith.constant 0 : index
    %c0_2 = arith.constant 0 : index
    %3 = vector.load %arg3[%c0, %c0_1, %c0_2] : memref<1x8x16xf32, #tpu.memory_space<vmem>>, vector<1x8x16xf32>
    %4 = vector.shape_cast %3 : vector<1x8x16xf32> to vector<8x16xf32>
    %c0_3 = arith.constant 0 : index
    %c0_4 = arith.constant 0 : index
    %c0_5 = arith.constant 0 : index
    %c0_6 = arith.constant 0 : index
    %5 = vector.load %arg4[%c0_3, %c0_4, %c0_5, %c0_6] : memref<1x1x2x16xf32, #tpu.memory_space<vmem>>, vector<1x1x2x16xf32>
    %6 = vector.shape_cast %5 : vector<1x1x2x16xf32> to vector<2x16xf32>
    %c8 = arith.constant 8 : index
    %c128 = arith.constant 128 : index
    %7 = vector.load %arg7[%c8, %c128] : memref<24x272xf32, #tpu.memory_space<vmem>>, vector<8x16xf32>
    tpu.vector_store %arg7[%c8, %c128], %4 {strides = array<i32>} : memref<24x272xf32, #tpu.memory_space<vmem>>, vector<8x16xf32>,
    %8 = vector.extract_strided_slice %6 {offsets = [0, 0], sizes = [1, 16], strides = [1, 1]} : vector<2x16xf32> to vector<1x16xf32>
    %c7 = arith.constant 7 : index
    %c128_7 = arith.constant 128 : index
    %9 = vector.load %arg7[%c7, %c128_7] : memref<24x272xf32, #tpu.memory_space<vmem>>, vector<1x16xf32>
    tpu.vector_store %arg7[%c7, %c128_7], %8 {strides = array<i32>} : memref<24x272xf32, #tpu.memory_space<vmem>>, vector<1x16xf32>,
    %10 = vector.extract_strided_slice %6 {offsets = [1, 0], sizes = [1, 16], strides = [1, 1]} : vector<2x16xf32> to vector<1x16xf32>
    %c16 = arith.constant 16 : index
    %c128_8 = arith.constant 128 : index
    %11 = vector.load %arg7[%c16, %c128_8] : memref<24x272xf32, #tpu.memory_space<vmem>>, vector<1x16xf32>
    tpu.vector_store %arg7[%c16, %c128_8], %10 {strides = array<i32>} : memref<24x272xf32, #tpu.memory_space<vmem>>, vector<1x16xf32>,
    %c7_9 = arith.constant 7 : index
    %c127 = arith.constant 127 : index
    %12 = vector.load %arg7[%c7_9, %c127] : memref<24x272xf32, #tpu.memory_space<vmem>>, vector<8x18xf32>
    %c8_10 = arith.constant 8 : index
    %c127_11 = arith.constant 127 : index
    %13 = vector.load %arg7[%c8_10, %c127_11] : memref<24x272xf32, #tpu.memory_space<vmem>>, vector<8x18xf32>
    %14 = arith.addf %12, %13 : vector<8x18xf32>
    %c9 = arith.constant 9 : index
    %c127_12 = arith.constant 127 : index
    %15 = vector.load %arg7[%c9, %c127_12] : memref<24x272xf32, #tpu.memory_space<vmem>>, vector<8x18xf32>
    %16 = arith.addf %14, %15 : vector<8x18xf32>
    %17 = vector.extract_strided_slice %16 {offsets = [0, 0], sizes = [8, 16], strides = [1, 1]} : vector<8x18xf32> to vector<8x16xf32>
    %18 = vector.extract_strided_slice %16 {offsets = [0, 1], sizes = [8, 16], strides = [1, 1]} : vector<8x18xf32> to vector<8x16xf32>
    %19 = arith.addf %17, %18 : vector<8x16xf32>
    %20 = vector.extract_strided_slice %16 {offsets = [0, 2], sizes = [8, 16], strides = [1, 1]} : vector<8x18xf32> to vector<8x16xf32>
    %21 = arith.addf %19, %20 : vector<8x16xf32>
    %cst = arith.constant 9.000000e+00 : f32
    %22 = vector.broadcast %cst : f32 to vector<8x16xf32>
    %23 = arith.mulf %22, %4 : vector<8x16xf32>
    %24 = arith.subf %23, %21 : vector<8x16xf32>
    %cst_13 = arith.constant 0.000000e+00 : f32
    %25 = vector.broadcast %cst_13 : f32 to vector<8x16xf32>
    %26 = arith.maximumf %24, %25 : vector<8x16xf32>
    %27 = tpu.iota {dimensions = array<i32: 0>} : vector<8x1xi32>
    %c1_i32 = arith.constant 1 : i32
    %28 = vector.broadcast %c1_i32 : i32 to vector<8x1xi32>
    %29 = arith.andi %27, %28 : vector<8x1xi32>
    %c0_i32_14 = arith.constant 0 : i32
    %30 = vector.broadcast %c0_i32_14 : i32 to vector<8x1xi32>
    %31 = arith.cmpi eq, %29, %30 : vector<8x1xi32>
    %32 = tpu.iota {dimensions = array<i32: 1>} : vector<1x16xi32>
    %c1_i32_15 = arith.constant 1 : i32
    %33 = vector.broadcast %c1_i32_15 : i32 to vector<1x16xi32>
    %34 = arith.andi %32, %33 : vector<1x16xi32>
    %c0_i32_16 = arith.constant 0 : i32
    %35 = vector.broadcast %c0_i32_16 : i32 to vector<1x16xi32>
    %36 = arith.cmpi eq, %34, %35 : vector<1x16xi32>
    %c1_i32_17 = arith.constant 1 : i32
    %37 = tpu.dynamic_rotate %26 by %c1_i32_17 dim 0 : vector<8x16xf32>, i32 -> vector<8x16xf32>
    %38 = vector.shape_cast %31 : vector<8x1xi1> to vector<8x1xi1>
    %39 = vector.broadcast %38 : vector<8x1xi1> to vector<8x16xi1>
    %40 = arith.select %39, %26, %37 : vector<8x16xi1>, vector<8x16xf32>
    %c1_i32_18 = arith.constant 1 : i32
    %41 = tpu.dynamic_rotate %40 by %c1_i32_18 dim 1 : vector<8x16xf32>, i32 -> vector<8x16xf32>
    %42 = vector.shape_cast %36 : vector<1x16xi1> to vector<1x16xi1>
    %43 = vector.broadcast %42 : vector<1x16xi1> to vector<8x16xi1>
    %44 = arith.select %43, %40, %41 : vector<8x16xi1>, vector<8x16xf32>
    %cst_19 = arith.constant 1.000000e-01 : f32
    %45 = vector.broadcast %cst_19 : f32 to vector<8x16xf32>
    %46 = arith.cmpf ogt, %26, %45 : vector<8x16xf32>
    %cst_20 = arith.constant 1.000000e-01 : f32
    %47 = vector.broadcast %cst_20 : f32 to vector<8x16xf32>
    %48 = arith.cmpf ogt, %44, %47 : vector<8x16xf32>
    %49 = arith.ori %46, %48 : vector<8x16xi1>
    %cst_21 = arith.constant 1.000000e+00 : f32
    %cst_22 = arith.constant 0.000000e+00 : f32
    %50 = vector.broadcast %cst_21 : f32 to vector<8x16xf32>
    %51 = vector.broadcast %cst_22 : f32 to vector<8x16xf32>
    %52 = arith.select %49, %50, %51 : vector<8x16xi1>, vector<8x16xf32>
    %c0_23 = arith.constant 0 : index
    %c0_24 = arith.constant 0 : index
    %c0_25 = arith.constant 0 : index
    %53 = vector.load %arg5[%c0_23, %c0_24, %c0_25] : memref<1x8x16xf32, #tpu.memory_space<vmem>>, vector<1x8x16xf32>
    %54 = vector.shape_cast %53 : vector<1x8x16xf32> to vector<8x16xf32>
    %55 = arith.negf %54 : vector<8x16xf32>
    %56 = math.exp %55 : vector<8x16xf32>
    %cst_26 = arith.constant 1.000000e+00 : f32
    %57 = vector.broadcast %cst_26 : f32 to vector<8x16xf32>
    %58 = arith.addf %57, %56 : vector<8x16xf32>
    %59 = arith.divf %57, %58 : vector<8x16xf32>
    %cst_27 = arith.constant 0.000000e+00 : f32
    %60 = vector.broadcast %cst_27 : f32 to vector<8x16xf32>
    %61 = arith.maximumf %54, %60 : vector<8x16xf32>
    %62 = arith.mulf %54, %52 : vector<8x16xf32>
    %63 = arith.subf %61, %62 : vector<8x16xf32>
    %cst_28 = arith.constant 0.000000e+00 : f32
    %64 = vector.broadcast %cst_28 : f32 to vector<8x16xf32>
    %65 = arith.cmpf oge, %54, %64 : vector<8x16xf32>
    %cst_29 = arith.constant 1.000000e+00 : f32
    %66 = vector.broadcast %cst_29 : f32 to vector<8x16xf32>
    %67 = arith.subf %66, %59 : vector<8x16xf32>
    %68 = arith.select %65, %59, %67 : vector<8x16xi1>, vector<8x16xf32>
    %69 = math.log %68 : vector<8x16xf32>
    %70 = arith.subf %63, %69 : vector<8x16xf32>
    %71 = arith.mulf %52, %59 : vector<8x16xf32>
    %72 = vector.shape_cast %71 : vector<8x16xf32> to vector<1x8x16xf32>
    %cst_30 = arith.constant dense<0.000000e+00> : vector<1xf32>
    %73 = vector.multi_reduction <add>, %72, %cst_30 [1, 2] : vector<1x8x16xf32> to vector<1xf32>
    %74 = vector.shape_cast %73 : vector<1xf32> to vector<1x1x1xf32>
    %75 = vector.extract %74[0, 0, 0] : f32 from vector<1x1x1xf32>
    %76 = vector.broadcast %75 : f32 to vector<1x1xf32>
    %77 = vector.shape_cast %59 : vector<8x16xf32> to vector<1x8x16xf32>
    %cst_31 = arith.constant dense<0.000000e+00> : vector<1xf32>
    %78 = vector.multi_reduction <add>, %77, %cst_31 [1, 2] : vector<1x8x16xf32> to vector<1xf32>
    %79 = vector.shape_cast %78 : vector<1xf32> to vector<1x1x1xf32>
    %80 = vector.extract %79[0, 0, 0] : f32 from vector<1x1x1xf32>
    %81 = vector.broadcast %80 : f32 to vector<1x1xf32>
    %82 = vector.shape_cast %52 : vector<8x16xf32> to vector<1x8x16xf32>
    %cst_32 = arith.constant dense<0.000000e+00> : vector<1xf32>
    %83 = vector.multi_reduction <add>, %82, %cst_32 [1, 2] : vector<1x8x16xf32> to vector<1xf32>
    %84 = vector.shape_cast %83 : vector<1xf32> to vector<1x1x1xf32>
    %85 = vector.extract %84[0, 0, 0] : f32 from vector<1x1x1xf32>
    %86 = vector.broadcast %85 : f32 to vector<1x1xf32>
    %87 = vector.shape_cast %70 : vector<8x16xf32> to vector<1x8x16xf32>
    %cst_33 = arith.constant dense<0.000000e+00> : vector<1xf32>
    %88 = vector.multi_reduction <add>, %87, %cst_33 [1, 2] : vector<1x8x16xf32> to vector<1xf32>
    %89 = vector.shape_cast %88 : vector<1xf32> to vector<1x1x1xf32>
    %90 = vector.extract %89[0, 0, 0] : f32 from vector<1x1x1xf32>
    %91 = vector.broadcast %90 : f32 to vector<1x1xf32>
    %92 = tpu.iota {dimensions = array<i32: 1>} : vector<1x128xi32>
    %c0_i32_34 = arith.constant 0 : i32
    %93 = vector.broadcast %c0_i32_34 : i32 to vector<1x128xi32>
    %94 = arith.cmpi eq, %92, %93 : vector<1x128xi32>
    %cst_35 = arith.constant 0.000000e+00 : f32
    %95 = vector.shape_cast %76 : vector<1x1xf32> to vector<1x1xf32>
    %96 = vector.broadcast %95 : vector<1x1xf32> to vector<1x128xf32>
    %97 = vector.broadcast %cst_35 : f32 to vector<1x128xf32>
    %98 = arith.select %94, %96, %97 : vector<1x128xi1>, vector<1x128xf32>
    %c1_i32_36 = arith.constant 1 : i32
    %99 = vector.broadcast %c1_i32_36 : i32 to vector<1x128xi32>
    %100 = arith.cmpi eq, %92, %99 : vector<1x128xi32>
    %cst_37 = arith.constant 0.000000e+00 : f32
    %101 = vector.shape_cast %81 : vector<1x1xf32> to vector<1x1xf32>
    %102 = vector.broadcast %101 : vector<1x1xf32> to vector<1x128xf32>
    %103 = vector.broadcast %cst_37 : f32 to vector<1x128xf32>
    %104 = arith.select %100, %102, %103 : vector<1x128xi1>, vector<1x128xf32>
    %105 = arith.addf %98, %104 : vector<1x128xf32>
    %c2_i32 = arith.constant 2 : i32
    %106 = vector.broadcast %c2_i32 : i32 to vector<1x128xi32>
    %107 = arith.cmpi eq, %92, %106 : vector<1x128xi32>
    %cst_38 = arith.constant 0.000000e+00 : f32
    %108 = vector.shape_cast %86 : vector<1x1xf32> to vector<1x1xf32>
    %109 = vector.broadcast %108 : vector<1x1xf32> to vector<1x128xf32>
    %110 = vector.broadcast %cst_38 : f32 to vector<1x128xf32>
    %111 = arith.select %107, %109, %110 : vector<1x128xi1>, vector<1x128xf32>
    %112 = arith.addf %105, %111 : vector<1x128xf32>
    %c3_i32 = arith.constant 3 : i32
    %113 = vector.broadcast %c3_i32 : i32 to vector<1x128xi32>
    %114 = arith.cmpi eq, %92, %113 : vector<1x128xi32>
    %cst_39 = arith.constant 0.000000e+00 : f32
    %115 = vector.shape_cast %91 : vector<1x1xf32> to vector<1x1xf32>
    %116 = vector.broadcast %115 : vector<1x1xf32> to vector<1x128xf32>
    %117 = vector.broadcast %cst_39 : f32 to vector<1x128xf32>
    %118 = arith.select %114, %116, %117 : vector<1x128xi1>, vector<1x128xf32>
    %119 = arith.addf %112, %118 : vector<1x128xf32>
    %c0_40 = arith.constant 0 : index
    %c0_41 = arith.constant 0 : index
    %c0_42 = arith.constant 0 : index
    %c0_43 = arith.constant 0 : index
    %120 = vector.load %arg6[%c0_40, %c0_41, %c0_42, %c0_43] : memref<1x1x8x128xf32, #tpu.memory_space<vmem>>, vector<1x1x8x128xf32>
    %121 = vector.shape_cast %119 : vector<1x128xf32> to vector<1x1x1x128xf32>
    %122 = vector.broadcast %121 : vector<1x1x1x128xf32> to vector<1x1x8x128xf32>
    %123 = arith.addf %120, %122 : vector<1x1x8x128xf32>
    %c0_44 = arith.constant 0 : index
    %c0_45 = arith.constant 0 : index
    %c0_46 = arith.constant 0 : index
    %c0_47 = arith.constant 0 : index
    %124 = vector.load %arg6[%c0_44, %c0_45, %c0_46, %c0_47] : memref<1x1x8x128xf32, #tpu.memory_space<vmem>>, vector<1x1x8x128xf32>
    tpu.vector_store %arg6[%c0_44, %c0_45, %c0_46, %c0_47], %123 {strides = array<i32>} : memref<1x1x8x128xf32, #tpu.memory_space<vmem>>, vector<1x1x8x128xf32>,
    return
  }
  func.func @transform_0(%arg0: i32, %arg1: i32, %arg2: i32) -> (i32, i32, i32) {
    %c1_i32 = arith.constant 1 : i32
    %0 = arith.muli %arg1, %c1_i32 : i32
    %1 = arith.addi %0, %arg2 : i32
    %c0_i32 = arith.constant 0 : i32
    %c0_i32_0 = arith.constant 0 : i32
    return %arg0, %1, %c0_i32 : i32, i32, i32
  }
  func.func @transform_1(%arg0: i32, %arg1: i32, %arg2: i32) -> (i32, i32, i32, i32) {
    %c1_i32 = arith.constant 1 : i32
    %0 = arith.muli %arg1, %c1_i32 : i32
    %1 = arith.addi %0, %arg2 : i32
    %c0_i32 = arith.constant 0 : i32
    %c0_i32_0 = arith.constant 0 : i32
    %c0_i32_1 = arith.constant 0 : i32
    return %arg0, %1, %c0_i32, %c0_i32_0 : i32, i32, i32, i32
  }
  func.func @transform_2(%arg0: i32, %arg1: i32, %arg2: i32) -> (i32, i32, i32) {
    %c1_i32 = arith.constant 1 : i32
    %0 = arith.muli %arg1, %c1_i32 : i32
    %1 = arith.addi %0, %arg2 : i32
    %c0_i32 = arith.constant 0 : i32
    %c0_i32_0 = arith.constant 0 : i32
    return %arg0, %1, %c0_i32 : i32, i32, i32
  }
  func.func @transform_3(%arg0: i32, %arg1: i32, %arg2: i32) -> (i32, i32, i32, i32) {
    %c0_i32 = arith.constant 0 : i32
    %c0_i32_0 = arith.constant 0 : i32
    %c0_i32_1 = arith.constant 0 : i32
    return %arg0, %arg1, %c0_i32, %c0_i32_0 : i32, i32, i32, i32
  }
}

</mosaic_0001>

<bundles_post_ra>
// kernel: tpu_custom_call.1
= control target key start
LH: loop header
LB: loop body
LE: loop exit
PB: predicated region body
PF: predicated region fallthrough
CT: control target
= control target key end

     0   :  { %s1257_s0 = inlined_call_operand.hbm [shape: f32[2,16,16], index: 0, kind: input, shape index: {}]   ;;  %s1258_s1 = inlined_call_operand.hbm [shape: f32[2,2,2,16], index: 1, kind: input, shape index: {}]   ;;  %s1259_s2 = inlined_call_operand.hbm [shape: f32[2,16,16], index: 2, kind: input, shape index: {}]   ;;  %s1260_s3 = inlined_call_operand.hbm [shape: f32[2,2,8,128], index: 3, kind: output, shape index: {}]  }
   0x1   :  { %1265 = sst [smem:[#allocation18_spill]] %s1258_s1 }
   0x2   :  { %8 = vsyncpa [#allocation4], 0 }
   0x3   :  { %10 = vsyncpa [#allocation4 + $0x1], 0 }
   0x4   :  { %11 = vsyncpa [#allocation7], 0 }
   0x5   :  { %13 = vsyncpa [#allocation7 + $0x1], 0 }
   0x6   :  { %14 = vsyncpa [#allocation5], 0 }
   0x7   :  { %16 = vsyncpa [#allocation5 + $0x1], 0  ;;  %s1017_s12 = smov 0   ;;  %s1019_s13 = smov 0  }
   0x8   :  { %s1021_s14 = smov 0   ;;  %s1023_s15 = smov 0  }
   0x9   :  { %s1025_s16 = smov 0   ;;  %s1027_s17 = smov 0  }
   0xa   :  { %s1029_s18 = smov 0   ;;  %s1031_s19 = smov 0  }
   0xb LB: > { %1266 = sst [smem:[#allocation13_spill]] %s977_s17  ;;  %s1058_s20 = sadd.s32 4294967295, %s985_s19   ;;  %s985_s19 = sphi %s1031_s19, %s22_s19   ;;  %s981_s18 = sphi %s1029_s18, %s1282_s18   ;;  %s977_s17 = sphi %s1027_s17, %s1281_s17   ;;  %s973_s16 = sphi %s1025_s16, %s1280_s16   ;;  %s969_s15 = sphi %s1023_s15, %s1279_s15   ;;  %s965_s14 = sphi %s1021_s14, %s1285_s14   ;;  %s961_s13 = sphi %s1019_s13, %s1284_s13   ;;  %s957_s12 = sphi %s1017_s12, %s1283_s12  }
   0xc   : > { %1267 = sst [smem:[#allocation14_spill]] %s981_s18  ;;  %s670_s21 = sadd.s32 4294967294, %s985_s19  }
   0xd   : > { %s37_s22 = sadd.s32 1, %s977_s17  ;;  %s41_s23 = sadd.s32 1, %s981_s18 }
   0xe   : > { %p39_p0 = scmp.ge.s32.totalorder %s37_s22, 2  ;;  %s52_s24 = sadd.s32 1, %s965_s14 }
   0xf   : > { %p59_p1 = scmp.ne.s32.totalorder %s965_s14, %s961_s13  ;;  %p60_p2 = scmp.eq.s32.totalorder %s985_s19, 0 }
  0x10   : > { %s1287_s22 = smov (%p39_p0, %s37_s22), 0  ;;  %s1289_s23 = smov (!%p39_p0, %s41_s23), %s981_s18 }
  0x11   : > { %1268 = sst [smem:[#allocation15_spill]] %s1287_s22  ;;  %s48_s25 = ssub.s32 %s977_s17, %s1287_s22 }
  0x12   : > { %p1072_p3 = por %p60_p2, %p59_p1  ;;  %p43_p4 = scmp.ge.s32.totalorder %s1289_s23, 2 }
  0x13   : > { %p65_p5 = scmp.ne.s32.totalorder %s961_s13, %s957_s12  ;;  %p66_p6 = scmp.eq.s32.totalorder %s1058_s20, 0 }
  0x14   : > { %p151_p7 = scmp.eq.s32.totalorder %s1058_s20, 3  ;;  %s1291_s23 = smov (%p43_p4, %s1289_s23), 0 }
  0x15   : > { %1270 = sst [smem:[#allocation16_spill]] %s1291_s23  ;;  %p1082_p8 = por %p66_p6, %p65_p5 }
  0x16   : > { %p1086_p9 = por %p151_p7, %p59_p1  ;;  %s47_s29 = ssub.s32 %s981_s18, %s1291_s23 }
  0x17   : > { %p157_p10 = scmp.eq.s32.totalorder %s670_s21, 3  ;;  %s49_s30 = sor.u32 %s48_s25, %s47_s29 }
  0x18   : > { %p50_p11 = scmp.eq.s32.totalorder %s49_s30, 0  ;;  %p723_p13 = scmp.lt.s32.totalorder %s985_s19, 4 }
  0x19   : > { %p1092_p12 = por %p157_p10, %p65_p5  ;;  %s1098_s5 = sand.u32 1, %s965_s14  }
  0x1a   : > { %s1101_s6 = scalar_select %p50_p11, %s965_s14, %s52_s24  }
  0x1b   : > { %s674_s7 = sshll.u32 %s981_s18, 1  ;;  %p1106_p0 = pnand %p723_p13, %p1072_p3 }
  0x1c   : > { %1274 = sst [smem:[#allocation17_spill]] %s1101_s6  ;;  %s1111_s9 = sadd.s32 %s977_s17, %s674_s7 }
  0x1d   : > { %s198_s10 = sand.u32 1, %s985_s19   ;;  %s676_s11 = sshll.u32 %s1098_s5, 1 }
  0x1e   : > { %s678_s21 = sshll.u32 %s1111_s9, 5  ;;  %s1276_s1 = sld [smem:[#allocation18_spill]] }
  0x1f   : > { %s202_s24 = scalar_lea.vmem [#allocation6], %s676_s11  ;;  %p682_p1 = scmp.ge.s32.totalorder %s985_s19, 1 }
  0x20   : > { %s212_s23 = sshll.u32 %s202_s24, 4  ;;  %p238_p2 = scmp.lt.s32.totalorder %s985_s19, 5  ;;  %s213_s23 = int_to_ptr.vmem [resolvable:$true] %s212_s23 }
  0x21   : > { %s1121_s26 = scalar_lea.sflag [#allocation7], %s198_s10  ;;  %p803_p3 = pneg %p1106_p0 }
  0x22   : > { %s814_s22 = scalar_lea.vmem %s213_s23, 32  ;;  %s987_s7 = smov [#allocation6]  }
  0x23   : > { %p815_p4 = scmp.ne.s32.totalorder %s213_s23, %s814_s22  ;;  %s819_s18 = sshll.u32 %s987_s7, 4  ;;  %s820_s18 = int_to_ptr.vmem [resolvable:$false] %s819_s18 }
  0x24   : > { %s210_s30 = scalar_lea.hbm %s1276_s1, %s678_s21  ;;  %s821_s25 = scalar_lea.vmem %s820_s18, 64 }
  0x25   : > { %p817_p5 = pnand %p815_p4, %p803_p3  ;;  %p822_p7 = scmp.lt.s32.totalorder %s213_s23, %s820_s18 }
  0x26   : > { %p823_p10 = scmp.lt.s32.totalorder %s821_s25, %s814_s22 }
  0x27   : > { %p818_p6 = pneg %p817_p5 }
  0x28   : > { %p824_p11 = por %p823_p10, %p822_p7 }
  0x2a   : > { %p825_p13 = pnand %p824_p11, %p818_p6 }
  0x2c   : > { %828 = shalt.err (!%p825_p13)
}
  0x2d   : > { %715 = dma.hbm_to_vmem [thread:$0]  (!%p1106_p0), %s210_s30, 32, %s213_s23, %s1121_s26  }
  0x2e   : > { %p1135_p4 = pnand %p682_p1, %p238_p2  ;;  %s673_s18 = sshll.u32 %s1098_s5, 3 }
  0x2f   : > { %s675_s22 = sshll.u32 %s1111_s9, 7  ;;  %s181_s24 = scalar_lea.vmem [#allocation3], %s673_s18 }
  0x30   : > { %s189_s29 = scalar_lea.hbm %s1257_s0, %s675_s22  ;;  %s191_s7 = sshll.u32 %s181_s24, 4  ;;  %s192_s7 = int_to_ptr.vmem [resolvable:$true] %s191_s7 }
  0x31   : > { %s1147_s17 = scalar_lea.hbm %s1259_s2, %s675_s22  ;;  %s178_s23 = scalar_lea.sflag [#allocation4], %s1098_s5 }
  0x32   : > { %s842_s30 = scalar_lea.vmem %s192_s7, 128  ;;  %s988_s9 = smov [#allocation3]  }
  0x33   : > { %p843_p1 = scmp.ne.s32.totalorder %s192_s7, %s842_s30  ;;  %s847_s6 = sshll.u32 %s988_s9, 4  ;;  %s848_s6 = int_to_ptr.vmem [resolvable:$false] %s847_s6 }
  0x34   : > { %s849_s11 = scalar_lea.vmem %s848_s6, 256  ;;  %p850_p6 = scmp.lt.s32.totalorder %s192_s7, %s848_s6 }
  0x35   : > { %p845_p2 = pnand %p843_p1, %p803_p3  ;;  %p851_p7 = scmp.lt.s32.totalorder %s849_s11, %s842_s30 }
  0x37   : > { %p846_p5 = pneg %p845_p2  ;;  %p852_p10 = por %p851_p7, %p850_p6 }
  0x39   : > { %p853_p11 = pnand %p852_p10, %p846_p5 }
  0x3b   : > { %856 = shalt.err (!%p853_p11)
}
  0x3c   : > { %712 = dma.hbm_to_vmem [thread:$0]  (!%p1106_p0), %s189_s29, 128, %s192_s7, %s178_s23  }
  0x3d   : > { %s223_s1 = scalar_lea.vmem [#allocation8], %s673_s18  ;;  %s989_s21 = smov [#allocation8]  }
  0x3e   : > { %s233_s5 = sshll.u32 %s223_s1, 4  ;;  %s875_s24 = sshll.u32 %s989_s21, 4  ;;  %s234_s5 = int_to_ptr.vmem [resolvable:$true] %s233_s5  ;;  %s876_s24 = int_to_ptr.vmem [resolvable:$false] %s875_s24 }
  0x3f   : > { %s870_s22 = scalar_lea.vmem %s234_s5, 128  ;;  %s877_s6 = scalar_lea.vmem %s876_s24, 256 }
  0x40   : > { %p871_p13 = scmp.ne.s32.totalorder %s234_s5, %s870_s22  ;;  %p878_p6 = scmp.lt.s32.totalorder %s234_s5, %s876_s24 }
  0x41   : > { %p879_p5 = scmp.lt.s32.totalorder %s877_s6, %s870_s22 }
  0x42   : > { %p873_p1 = pnand %p871_p13, %p803_p3 }
  0x43   : > { %p880_p7 = por %p879_p5, %p878_p6 }
  0x44   : > { %p874_p2 = pneg %p873_p1 }
  0x46   : > { %p881_p10 = pnand %p880_p7, %p874_p2 }
  0x48   : > { %884 = shalt.err (!%p881_p10)
}
  0x49   : > { %718 = dma.hbm_to_vmem [thread:$0]  (!%p1106_p0), %s1147_s17, 128, %s234_s5, %s1121_s26  }
  0x4a   : > { %242 = sbr.rel (%p1135_p4) target bundleno = 926 (0x39e), region = 32  ;;  %s1165_s18 = sand.u32 (!%p1135_p4), 1, %s961_s13  }
  0x4b   : > { %s1168_s29 = sshll.u32 (!%p1135_p4), %s1165_s18, 3  ;;  %s245_s7 = scalar_lea.sflag (!%p1135_p4), [#allocation4], %s1165_s18 }
  0x4c   : > { %s248_s25 = scalar_lea.vmem (!%p1135_p4), [#allocation3], %s1168_s29 }
  0x4f   : > { %944 = dma.done.wait (%p1082_p8), %s245_s7, 128  }
  0x50   : > { %946 = vsyncadd (%p1082_p8), %s245_s7, 4294967168  ;;  %s253_s17 = sand.u32 1, %s1058_s20   ;;  %s684_s8 = sshll.u32 %s1165_s18, 1 }
  0x51   : > { %s254_s26 = scalar_lea.sflag [#allocation7], %s253_s17  ;;  %s257_s10 = scalar_lea.vmem [#allocation6], %s684_s8 }
  0x52   : > { %948 = dma.done.wait (%p1082_p8), %s254_s26, 160  }
  0x53   : > { %950 = vsyncadd (%p1082_p8), %s254_s26, 4294967136  ;;  %vm309_vm0 = vcmask 1047680   ;;  %vm311_vm1 = vcmask 130048   ;;  %v990_v0 = vmov 0.0   ;;  %vm322_vm2 = vcmask 122880   ;;  %v318_v1 = vld [vmem:[%s248_s25] sm:$0xff] }
  0x54   : > { %310 = vst.msk [vmem:[#allocation2 + $0x8] sm:$0xff] %vm309_vm0, %v990_v0  ;;  %313 = vst.msk [vmem:[#allocation2 + $0x20] sm:$0xff] %vm309_vm0, %v990_v0  ;;  %v319_v2 = vld [vmem:[%s257_s10] sm:$0x3]  ;;  %vm352_vm3 = vcmask 1045504   ;;  %s991_s20 = smov 127   ;;  %v410_v47 = vlaneseq }
  0x55   : > { %306 = vst [vmem:[#allocation2] sm:$0xff] %v990_v0  ;;  %307 = vst [vmem:[#allocation2 + $0x18] sm:$0xff] %v990_v0  ;;  %v325_v3 = vrot.slane %v319_v2, 1  ;;  %s992_s27 = smov 126   ;;  %v336_v17 = vrot.slane %v990_v0, 1  ;;  %vm394_vm4 = vcmask 1040384  }
  0x56   : > { %308 = vst [vmem:[#allocation2 + $0x30] sm:$0xff] %v990_v0  ;;  %315 = vst.msk [vmem:[#allocation2 + $0x38] sm:$0xff] %vm309_vm0, %v990_v0  ;;  %s993_s23 = smov 1   ;;  %v411_v48 = vshrl.u32 %v410_v47, 7  ;;  %v389_v49 = vmul.f32 9.0, %v318_v1  ;;  %vm405_vm5 = vcmask 7168  }
  0x57   : > { %321 = vst.msk [vmem:[#allocation2 + $0x20] sm:$0xff] %vm311_vm1, %v318_v1  ;;  %s994_s30 = smov 16   ;;  %s266_s9 = scalar_lea.vmem [#allocation8], %s1168_s29 }
  0x58   : > { %323 = vst.msk [vmem:[#allocation2 + $0xf] sm:$0x1] %vm322_vm2, %v319_v2  ;;  %327 = vst.msk [vmem:[#allocation2 + $0x38] sm:$0x1] %vm322_vm2, %v325_v3  ;;  %v412_v53 = vand.u32 1, %v411_v48  ;;  %v440_v60 = vld [vmem:[%s266_s9] sm:$0xff] }
  0x59   : > { %v687_v61 = vmul.f32 -1.442695, %v440_v60  ;;  %s995_s11 = smov 113   ;;  %vm450_vm7 = vcmp.ge.f32.partialorder %v440_v60, 0.0  ;;  %s689_s22 = sshll.u32 %s973_s16, 1 }
  0x5a   : > { %vm413_vm6 = vcmp.eq.s32.totalorder %v412_v53, 0  ;;  %s527_s6 = sadd.s32 %s969_s15, %s689_s22  ;;  %s298_s7 = scalar_lea.vmem [#allocation9], %s1168_s29 }
  0x5b   : > { %795 = vpow2.f32 %v687_v61  ;;  %s690_s16 = sshll.u32 %s527_s6, 7  ;;  %s531_s25 = sshll.u32 %s298_s7, 4  ;;  %s532_s25 = int_to_ptr.vmem [resolvable:$true] %s531_s25 }
  0x5c   : > { %v328_v18 = vld [vmem:[#allocation2] sm:$0x80]  ;;  %v344_v19 = vld [vmem:[#allocation2 + $0x18] sm:$0xfe]  ;;  %s529_s26 = scalar_lea.hbm %s1260_s3, %s690_s16  ;;  %s516_s10 = scalar_lea.sflag [#allocation5], %s1165_s18 }
  0x5d   : > { %v346_v20 = vld [vmem:[#allocation2 + $0x30] sm:$0x1]  ;;  %v340_v21 = vadd.f32 %v336_v17, %v328_v18  ;;  %v353_v22 = vrot.slane %v344_v19, 2  ;;  %v330_v23 = vld [vmem:[#allocation2 + $0x18] sm:$0x7f]  ;;  %s996_s15 = smov [#allocation9]  }
  0x5e   : > { %v333_v5 = vld [vmem:[#allocation2 + $0x20] sm:$0xff]  ;;  %v355_v24 = vrot.slane %v346_v20, 2  ;;  %v342_v26 = vadd.f32 %v336_v17, %v330_v23 }
  0x5f   : > { %v329_v4 = vld [vmem:[#allocation2 + $0x8] sm:$0x80]  ;;  %v345_v6 = vld [vmem:[#allocation2 + $0x20] sm:$0xfe]  ;;  %v337_v7 = vrot.slane %v333_v5, 1  ;;  %v363_v25 = vadd.f32 %v353_v22, %v340_v21 }
  0x60   : > { %v354_v8 = vrot.slane %v345_v6, 2  ;;  %v331_v9 = vld [vmem:[#allocation2 + $0x20] sm:$0x7f]  ;;  %v347_v10 = vld [vmem:[#allocation2 + $0x38] sm:$0x1]  ;;  %v356_v27 = vsel %vm352_vm3, %v353_v22, %v355_v24 }
  0x61   : > { %v341_v11 = vadd.f32 %v337_v7, %v329_v4  ;;  %v343_v12 = vadd.f32 %v337_v7, %v331_v9  ;;  %v357_v13 = vrot.slane %v347_v10, 2  ;;  %v365_v32 = vadd.f32 %v356_v27, %v342_v26 }
  0x62   : > { %v1199_v7 = vand.u32 127, %v410_v47 }
  0x63   : > { %v364_v14 = vadd.f32 %v354_v8, %v341_v11  ;;  %v358_v15 = vsel %vm352_vm3, %v354_v8, %v357_v13 }
  0x64   : > { %v366_v16 = vadd.f32 %v358_v15, %v343_v12  ;;  %v416_v8 = vand.u32 1, %v1199_v7  ;;  %v447_v12 = vmax.f32 %v440_v60, 0.0  ;;  %vm497_vm12 = vcmp.eq.s32.totalorder %v1199_v7, 0 }
  0x65   : > { %369 = vrot.lane.b32.xlu0 %v364_v14, %s991_s20  ;;  %379 = vrot.lane.b32.xlu1 %v364_v14, %s992_s27  ;;  %vm500_vm13 = vcmp.eq.s32.totalorder %v1199_v7, 1  ;;  %vm504_vm14 = vcmp.eq.s32.totalorder %v1199_v7, 2  ;;  %vm508_vm15 = vcmp.eq.s32.totalorder %v1199_v7, 3 }
  0x66   : > { %vm417_vm8 = vcmp.eq.s32.totalorder %v416_v8, 0 }
  0x68   : > { %v796_v1 = vpop.eup %795 }
  0x69   : > { %371 = vrot.lane.b32.xlu0 %v366_v16, %s991_s20  ;;  %381 = vrot.lane.b32.xlu1 %v366_v16, %s992_s27  ;;  %v444_v2 = vadd.f32 1.0, %v796_v1  ;;  %s885_s20 = scalar_lea.vmem %s532_s25, 128  ;;  %s889_s27 = sshll.u32 %s996_s15, 4  ;;  %s890_s27 = int_to_ptr.vmem [resolvable:$false] %s889_s27 }
  0x6a   : > { %p886_p8 = scmp.ne.s32.totalorder %s532_s25, %s885_s20  ;;  %p892_p4 = scmp.lt.s32.totalorder %s532_s25, %s890_s27 }
  0x6b   : > { %797 = vrcp.f32 %v444_v2 }
  0x6c   : > { %p887_p0 = pnand %p886_p8, %p1086_p9 }
  0x6e   : > { %p888_p3 = pneg %p887_p0 }
  0x78   : > { %v798_v3 = vpop.eup %797 }
  0x79   : > { %v467_v4 = vsel %vm311_vm1, %v798_v3, 0.0  ;;  %v451_v5 = vsub.f32 1.0, %v798_v3 }
  0x7b   : > { %v452_v6 = vsel %vm450_vm7, %v798_v3, %v451_v5 }
  0x7c   : > { %799 = vlog2.f32 %v452_v6 }
  0x89   : > { %v800_v11 = vpop.eup %799 }
  0x8a   : > { %v454_v17 = vmul.f32 0.6931472, %v800_v11 }
  0xd7   : > { %v370_v28 = vpop.permute.xlu0 %369  ;;  %v380_v29 = vpop.permute.xlu1 %379 }
  0xd8   : > { %v375_v30 = vadd.f32 %v370_v28, %v363_v25  ;;  %v376_v31 = vadd.f32 %v370_v28, %v364_v14 }
  0xda   : > { %v385_v35 = vadd.f32 %v380_v29, %v375_v30  ;;  %v386_v36 = vadd.f32 %v380_v29, %v376_v31 }
  0xdb   : > { %v372_v33 = vpop.permute.xlu0 %371  ;;  %v382_v34 = vpop.permute.xlu1 %381 }
  0xdc   : > { %v377_v37 = vadd.f32 %v372_v33, %v365_v32  ;;  %v378_v38 = vadd.f32 %v372_v33, %v366_v16  ;;  %v395_v41 = vrot.slane %v385_v35, 7  ;;  %v398_v42 = vrot.slane %v386_v36, 7 }
  0xde   : > { %v387_v39 = vadd.f32 %v382_v34, %v377_v37  ;;  %v388_v40 = vadd.f32 %v382_v34, %v378_v38 }
  0xe0   : > { %v396_v43 = vrot.slane %v387_v39, 7  ;;  %v399_v44 = vrot.slane %v388_v40, 7 }
  0xe2   : > { %v400_v45 = vsel %vm394_vm4, %v398_v42, %v399_v44  ;;  %v397_v46 = vsel %vm394_vm4, %v395_v41, %v396_v43 }
  0xe3   : > { %403 = vrot.lane.b32.xlu1 %v400_v45, %s993_s23  ;;  %401 = vrot.lane.b32.xlu0 %v397_v46, %s993_s23  ;;  %s891_s23 = scalar_lea.vmem %s890_s27, 256 }
  0xe4   : > { %p893_p11 = scmp.lt.s32.totalorder %s891_s23, %s885_s20 }
  0xe6   : > { %p894_p13 = por %p893_p11, %p892_p4 }
  0xe8   : > { %p895_p1 = pnand %p894_p13, %p888_p3 }
 0x155   : > { %v404_v50 = vpop.permute.xlu1 %403  ;;  %v402_v51 = vpop.permute.xlu0 %401 }
 0x156   : > { %v406_v52 = vsel %vm405_vm5, %v402_v51, %v404_v50 }
 0x157   : > { %v408_v54 = vsub.f32 %v389_v49, %v406_v52 }
 0x159   : > { %v409_v55 = vmax.f32 %v408_v54, 0.0 }
 0x15b   : > { %v418_v56 = vrot.slane %v409_v55, 7  ;;  %vm436_vm9 = vcmp.gt.f32.partialorder %v409_v55, 0.1 }
 0x15d   : > { %v421_v57 = vsel %vm413_vm6, %v409_v55, %v418_v56 }
 0x15e   : > { %423 = vrot.lane.b32.xlu0 %v421_v57, %s994_s30 }
 0x1d0   : > { %v424_v58 = vpop.permute.xlu0 %423 }
 0x1d1   : > { %v425_v59 = vsel %vm309_vm0, %v424_v58, %v421_v57 }
 0x1d2   : > { %426 = vrot.lane.b32.xlu1 %v425_v59, %s994_s30 }
 0x244   : > { %v427_v62 = vpop.permute.xlu1 %426 }
 0x245   : > { %v428_v63 = vsel %vm309_vm0, %v427_v62, %v421_v57 }
 0x246   : > { %432 = vrot.lane.b32.xlu0 %v428_v63, %s995_s11 }
 0x265   : > { %468 = vadd.xlane.f32.xlu0 %v467_v4 }
 0x2b8   : > { %v433_v9 = vpop.permute.xlu0 %432 }
 0x2b9   : > { %v435_v10 = vsel %vm417_vm8, %v421_v57, %v433_v9 }
 0x2ba   : > { %vm437_vm10 = vcmp.gt.f32.partialorder %v435_v10, 0.1 }
 0x2bb   : > { %vm438_vm11 = vmor %vm436_vm9, %vm437_vm10 }
 0x2bc   : > { %v439_v13 = vsel %vm438_vm11, 1.0, %v990_v0 }
 0x2bd   : > { %v477_v14 = vsel %vm311_vm1, %v439_v13, 0.0  ;;  %v448_v15 = vmul.f32 %v440_v60, %v439_v13  ;;  %v456_v16 = vmul.f32 %v798_v3, %v439_v13 }
 0x2be   : > { %478 = vadd.xlane.f32.xlu0 %v477_v14 }
 0x2bf   : > { %v457_v18 = vsel %vm311_vm1, %v456_v16, 0.0  ;;  %v449_v19 = vsub.f32 %v447_v12, %v448_v15 }
 0x2c0   : > { %458 = vadd.xlane.f32.xlu1 %v457_v18 }
 0x2c1   : > { %v455_v20 = vsub.f32 %v449_v19, %v454_v17 }
 0x2c3   : > { %v487_v21 = vsel %vm311_vm1, %v455_v20, 0.0 }
 0x2c4   : > { %488 = vadd.xlane.f32.xlu1 %v487_v21 }
 0x2ee   : > { %v469_v22 = vpop.xlane.xlu0 %468 }
 0x2ef   : > { %v470_v23 = vrot.slane %v469_v22, 4 }
 0x2f1   : > { %v471_v24 = vadd.f32 %v470_v23, %v469_v22 }
 0x2f3   : > { %v472_v0 = vrot.slane %v471_v24, 2 }
 0x2f5   : > { %v473_v33 = vadd.f32 %v472_v0, %v471_v24 }
 0x2f7   : > { %v474_v39 = vrot.slane %v473_v33, 1 }
 0x2f9   : > { %v475_v45 = vadd.f32 %v474_v39, %v473_v33 }
 0x347   : > { %v479_v25 = vpop.xlane.xlu0 %478 }
 0x348   : > { %v480_v26 = vrot.slane %v479_v25, 4 }
 0x349   : > { %v459_v27 = vpop.xlane.xlu1 %458 }
 0x34a   : > { %v481_v28 = vadd.f32 %v480_v26, %v479_v25  ;;  %v460_v29 = vrot.slane %v459_v27, 4 }
 0x34c   : > { %v482_v30 = vrot.slane %v481_v28, 2  ;;  %v461_v31 = vadd.f32 %v460_v29, %v459_v27 }
 0x34d   : > { %v489_v32 = vpop.xlane.xlu1 %488 }
 0x34e   : > { %v483_v34 = vadd.f32 %v482_v30, %v481_v28  ;;  %v462_v35 = vrot.slane %v461_v31, 2  ;;  %v490_v36 = vrot.slane %v489_v32, 4 }
 0x350   : > { %v491_v37 = vadd.f32 %v490_v36, %v489_v32  ;;  %v463_v38 = vadd.f32 %v462_v35, %v461_v31  ;;  %v484_v42 = vrot.slane %v483_v34, 1 }
 0x352   : > { %v492_v40 = vrot.slane %v491_v37, 2  ;;  %v464_v41 = vrot.slane %v463_v38, 1  ;;  %v485_v46 = vadd.f32 %v484_v42, %v483_v34 }
 0x354   : > { %v493_v43 = vadd.f32 %v492_v40, %v491_v37  ;;  %v465_v44 = vadd.f32 %v464_v41, %v463_v38 }
 0x356   : > { %693 = vpush %v465_v44  ;;  %v494_v47 = vrot.slane %v493_v43, 1 }
 0x357   : > { %695 = vpush %v475_v45 }
 0x358   : > { %697 = vpush %v485_v46  ;;  %v495_v48 = vadd.f32 %v494_v47, %v493_v43 }
 0x35a   : > { %699 = vpush %v495_v48 }
 0x387   : > { %s694_s1 = spop %693 }
 0x388   : > { %v498_v49 = vstv %s694_s1  ;;  %s696_s5 = spop %695 }
 0x389   : > { %v499_v50 = vsel %vm497_vm12, %v498_v49, 0.0  ;;  %v501_v51 = vstv %s696_s5  ;;  %s698_s21 = spop %697 }
 0x38a   : > { %v502_v52 = vsel %vm500_vm13, %v501_v51, 0.0  ;;  %v505_v53 = vstv %s698_s21 }
 0x38b   : > { %v503_v54 = vadd.f32 %v502_v52, %v499_v50  ;;  %s700_s24 = spop %699  ;;  %v506_v55 = vsel %vm504_vm14, %v505_v53, 0.0 }
 0x38c   : > { %v509_v56 = vstv %s700_s24 }
 0x38d   : > { %v507_v57 = vadd.f32 %v506_v55, %v503_v54  ;;  %v510_v58 = vsel %vm508_vm15, %v509_v56, 0.0 }
 0x38f   : > { %v511_v59 = vadd.f32 %v510_v58, %v507_v57 }
 0x391   : > { %514 = vst [vmem:[%s298_s7] sm:$0xff] %v511_v59 }
 0x392   : > { %898 = shalt.err (!%p895_p1)
}
 0x393   : > { %s899_s29 = scalar_lea.hbm %s529_s26, 128  ;;  %s903_s9 = scalar_lea.hbm %s1260_s3, 512 }
 0x394   : > { %p900_p2 = scmp.ne.s32.totalorder %s529_s26, %s899_s29  ;;  %p904_p7 = scmp.lt.s32.totalorder %s529_s26, %s1260_s3 }
 0x395   : > { %p905_p10 = scmp.lt.s32.totalorder %s903_s9, %s899_s29 }
 0x396   : > { %p901_p6 = pnand %p900_p2, %p1086_p9 }
 0x397   : > { %p906_p8 = por %p905_p10, %p904_p7 }
 0x398   : > { %p902_p5 = pneg %p901_p6 }
 0x39a   : > { %p907_p0 = pnand %p906_p8, %p902_p5 }
 0x39c   : > { %910 = shalt.err (!%p907_p0)
}
 0x39d   : > { %707 = dma.vmem_to_hbm [thread:$0]  (%p1086_p9), %s532_s25, 128, %s529_s26, %s516_s10  }
 0x39e PF: > { %p724_p3 = scmp.ge.s32.totalorder %s985_s19, 2  ;;  %s543_s5 = sand.u32 1, %s957_s12  }
 0x39f   : > { %s544_s22 = scalar_lea.sflag [#allocation5], %s543_s5 }
 0x3a0   : > { %p720_p4 = pnand %p724_p3, %p1092_p12 }
 0x3a2   : > { %p721_p11 = pneg %p720_p4 }
 0x3a4   : > { %952 = dma.done.wait (%p721_p11), %s544_s22, 128  }
 0x3a5   : > { %954 = vsyncadd (%p721_p11), %s544_s22, 4294967168  ;;  %s22_s19 = sadd.s32 1, %s985_s19   ;;  %s1278_s21 = sld [smem:[#allocation17_spill]] }
 0x3a6   : > { %p19_p13 = scmp.ge.s32.totalorder %s22_s19, 6   ;;  %s1279_s15 = sld [smem:[#allocation13_spill]] }
 0x3a7   : > { %s1280_s16 = sld [smem:[#allocation14_spill]]  ;;  %s1283_s12 = smov %s961_s13 }
 0x3a8   : > { %s1281_s17 = sld [smem:[#allocation15_spill]]  ;;  %s1284_s13 = smov %s965_s14 }
 0x3a9   : > { %s1282_s18 = sld [smem:[#allocation16_spill]]  ;;  %21 = sbr.rel (!%p19_p13) target bundleno = 11 (0xb), region = 105 }
 0x3ab   : > { %s1285_s14 = smov %s1278_s21 }
 0x3ae   :  { %549 = vsyncpa [#allocation4], 1 }
 0x3af   :  { %551 = vsyncpa [#allocation4 + $0x1], 1 }
 0x3b0   :  { %552 = vsyncpa [#allocation7], 1 }
 0x3b1   :  { %554 = vsyncpa [#allocation7 + $0x1], 1 }
 0x3b2   :  { %555 = vsyncpa [#allocation5], 1 }
 0x3b3   :  { %557 = vsyncpa [#allocation5 + $0x1], 1 }

</bundles_post_ra>
